<compile_context>
chip_gen: v7x
topology: tpu7x:2x2x1
jax: 0.10.0
libtpu: 0.0.40
codegen_flags: <defaults>
</compile_context>

<pallas_src>
import functools

import jax
import jax.numpy as jnp
from jax.experimental import pallas as pl
from jax.experimental.pallas import tpu as pltpu

NEG_SLOPE = 0.01  # F.leaky_relu default negative_slope


def _leaky_relu(v):
    return jnp.where(v > 0, v, NEG_SLOPE * v)


def _round_up(x, m):
    return ((x + m - 1) // m) * m


def translator_kernel(x_ref, tid_ref,
                      w_e1_ref, b_e1_ref,
                      w_e2_ref, b_e2_ref,
                      w1x_ref, w1t_ref, b1_ref,
                      w4_ref, b4_ref,
                      out_ref, *, n_dim_coding, p_coding):
    # ---- task-code bit unpack (VPU int ops, co-issues under the matmuls) ----
    tid = tid_ref[...]                                        # (TB, 1) int32
    mask = jnp.int32(2 ** n_dim_coding - 1)
    codes = (tid * jnp.int32(p_coding)) & mask                # == % 2**n (non-neg)
    bit_idx = jax.lax.broadcasted_iota(
        jnp.int32, (tid.shape[0], n_dim_coding), 1)           # (TB, n) LSB-first
    bits = ((codes >> bit_idx) & 1).astype(jnp.float32)       # (TB, n)

    # ---- task-id encoder ----
    t = jnp.dot(bits, w_e1_ref[...],
                preferred_element_type=jnp.float32) + b_e1_ref[...]
    t = _leaky_relu(t)
    t = jnp.dot(t, w_e2_ref[...],
                preferred_element_type=jnp.float32) + b_e2_ref[...]
    t = _leaky_relu(t)

    # ---- torch.cat([x, t], dim=1) @ W1.T  ==  x @ W1x + t @ W1t ----
    x = x_ref[...]
    h = (jnp.dot(x, w1x_ref[...], preferred_element_type=jnp.float32)
         + jnp.dot(t, w1t_ref[...], preferred_element_type=jnp.float32)
         + b1_ref[...])
    h = _leaky_relu(h)

    # ---- fc4 (output columns zero-padded to a multiple of 128 lanes) ----
    out_ref[...] = (jnp.dot(h, w4_ref[...], preferred_element_type=jnp.float32)
                    + b4_ref[...])


def init_params(key, n_dim_coding, latent_size, d):
    """Deterministic init mimicking nn.Linear default (uniform +-1/sqrt(fan_in))."""
    def linear(k, fan_in, fan_out):
        kw, kb = jax.random.split(k)
        bound = 1.0 / jnp.sqrt(float(fan_in))
        w = jax.random.uniform(kw, (fan_in, fan_out), jnp.float32, -bound, bound)
        b = jax.random.uniform(kb, (1, fan_out), jnp.float32, -bound, bound)
        return w, b

    k1, k2, k3, k4 = jax.random.split(key, 4)
    w_e1, b_e1 = linear(k1, n_dim_coding, n_dim_coding * 3)
    w_e2, b_e2 = linear(k2, n_dim_coding * 3, n_dim_coding * 2)
    w1, b1 = linear(k3, n_dim_coding * 2 + latent_size, latent_size * d // 2)
    w4, b4 = linear(k4, latent_size * d // 2, latent_size * d)
    # Split fc1 weight: rows [0:latent_size] act on x, rows [latent_size:] on task codes
    w1x = w1[:latent_size, :]
    w1t = w1[latent_size:, :]
    return dict(w_e1=w_e1, b_e1=b_e1, w_e2=w_e2, b_e2=b_e2,
                w1x=w1x, w1t=w1t, b1=b1, w4=w4, b4=b4)


def translator_forward(x, task_id, params, *, n_dim_coding, p_coding,
                       latent_size, d, tb=None):
    B = x.shape[0]
    out_dim = latent_size * d
    out_pad = _round_up(out_dim, 128)          # lane-dense output store

    # Batch tile: >=256 rows when batch is large, multiple of 8 sublanes always.
    if tb is None:
        tb = min(256, _round_up(B, 8))
    B_pad = _round_up(B, tb)

    x_f = x.astype(jnp.float32)
    tid = task_id.astype(jnp.int32).reshape(B, 1)
    if B_pad != B:
        x_f = jnp.pad(x_f, ((0, B_pad - B), (0, 0)))
        tid = jnp.pad(tid, ((0, B_pad - B), (0, 0)))

    w4 = params["w4"]
    b4 = params["b4"]
    if out_pad != out_dim:
        w4 = jnp.pad(w4, ((0, 0), (0, out_pad - out_dim)))   # zero-pad columns
        b4 = jnp.pad(b4, ((0, 0), (0, out_pad - out_dim)))

    weights = (params["w_e1"], params["b_e1"],
               params["w_e2"], params["b_e2"],
               params["w1x"], params["w1t"], params["b1"],
               w4, b4)

    def resident(arr):
        # Constant index_map: weight tile re-used (VMEM-resident) for every batch tile.
        return pl.BlockSpec(arr.shape, lambda i: (0,) * arr.ndim)

    kernel = functools.partial(translator_kernel,
                               n_dim_coding=n_dim_coding, p_coding=p_coding)

    out = pl.pallas_call(
        kernel,
        out_shape=jax.ShapeDtypeStruct((B_pad, out_pad), jnp.float32),
        grid_spec=pltpu.PrefetchScalarGridSpec(
            num_scalar_prefetch=0,
            grid=(B_pad // tb,),
            in_specs=[pl.BlockSpec((tb, latent_size), lambda i: (i, 0)),  # x
                      pl.BlockSpec((tb, 1), lambda i: (i, 0))]            # task ids
                     + [resident(a) for a in weights],
            out_specs=pl.BlockSpec((tb, out_pad), lambda i: (i, 0)),
        ),
        compiler_params=pltpu.CompilerParams(
            dimension_semantics=("parallel",)),   # megacore shard batch tiles (v7x)
    )(x_f, tid, *weights)

    return out[:B, :out_dim]


def translator_forward_ref(x, task_id, params, *, n_dim_coding, p_coding):
    """Pure-JAX reference for correctness check."""
    codes = (task_id.astype(jnp.int32) * jnp.int32(p_coding)) % jnp.int32(2 ** n_dim_coding)
    bit_idx = jnp.arange(n_dim_coding, dtype=jnp.int32)
    bits = ((codes[:, None] >> bit_idx[None, :]) & 1).astype(jnp.float32)
    t = _leaky_relu(bits @ params["w_e1"] + params["b_e1"])
    t = _leaky_relu(t @ params["w_e2"] + params["b_e2"])
    h = _leaky_relu(x @ params["w1x"] + t @ params["w1t"] + params["b1"])
    return h @ params["w4"] + params["b4"]


if __name__ == "__main__":
    # Small, forward-consistent shapes
    n_dim_coding = 8
    p_coding = 307
    latent_size = 16
    binary_latent_size = 4   # unused in forward (kept for constructor parity)
    d = 4
    B = 8

    key = jax.random.PRNGKey(0)
    k_params, k_x, k_tid = jax.random.split(key, 3)

    params = init_params(k_params, n_dim_coding, latent_size, d)
    x = jax.random.normal(k_x, (B, latent_size), jnp.float32)
    task_id = jax.random.randint(k_tid, (B,), 0, 10, jnp.int32)

    out = translator_forward(x, task_id, params,
                             n_dim_coding=n_dim_coding, p_coding=p_coding,
                             latent_size=latent_size, d=d)
    out = jax.block_until_ready(out)

    ref = translator_forward_ref(x, task_id, params,
                                 n_dim_coding=n_dim_coding, p_coding=p_coding)
    assert out.shape == (B, latent_size * d)
    assert jnp.allclose(out, ref, atol=1e-5, rtol=1e-5)

    print("KERNEL_OK")
</pallas_src>

<mosaic_0001>
module attributes {stable_mosaic.version = 11 : i64} {
  func.func @translator_kernel(%arg0: i32, %arg1: memref<8x16xf32, #tpu.memory_space<vmem>>, %arg2: memref<8x1xi32, #tpu.memory_space<vmem>>, %arg3: memref<8x24xf32, #tpu.memory_space<vmem>>, %arg4: memref<1x24xf32, #tpu.memory_space<vmem>>, %arg5: memref<24x16xf32, #tpu.memory_space<vmem>>, %arg6: memref<1x16xf32, #tpu.memory_space<vmem>>, %arg7: memref<16x32xf32, #tpu.memory_space<vmem>>, %arg8: memref<16x32xf32, #tpu.memory_space<vmem>>, %arg9: memref<1x32xf32, #tpu.memory_space<vmem>>, %arg10: memref<32x128xf32, #tpu.memory_space<vmem>>, %arg11: memref<1x128xf32, #tpu.memory_space<vmem>>, %arg12: memref<8x128xf32, #tpu.memory_space<vmem>>) attributes {dimension_semantics = [#tpu.dimension_semantics<parallel>], iteration_bounds = array<i64: 1>, scalar_prefetch = 0 : i64, scratch_operands = 0 : i64, tpu.core_type = #tpu.core_type<tc>, window_params = [{transform_indices = @transform_0, window_bounds = array<i64: 8, 16>}, {transform_indices = @transform_1, window_bounds = array<i64: 8, 1>}, {pipeline_mode = #tpu.pipeline_mode<synchronous>, transform_indices = @transform_2, window_bounds = array<i64: 8, 24>}, {pipeline_mode = #tpu.pipeline_mode<synchronous>, transform_indices = @transform_3, window_bounds = array<i64: 1, 24>}, {pipeline_mode = #tpu.pipeline_mode<synchronous>, transform_indices = @transform_4, window_bounds = array<i64: 24, 16>}, {pipeline_mode = #tpu.pipeline_mode<synchronous>, transform_indices = @transform_5, window_bounds = array<i64: 1, 16>}, {pipeline_mode = #tpu.pipeline_mode<synchronous>, transform_indices = @transform_6, window_bounds = array<i64: 16, 32>}, {pipeline_mode = #tpu.pipeline_mode<synchronous>, transform_indices = @transform_7, window_bounds = array<i64: 16, 32>}, {pipeline_mode = #tpu.pipeline_mode<synchronous>, transform_indices = @transform_8, window_bounds = array<i64: 1, 32>}, {pipeline_mode = #tpu.pipeline_mode<synchronous>, transform_indices = @transform_9, window_bounds = array<i64: 32, 128>}, {pipeline_mode = #tpu.pipeline_mode<synchronous>, transform_indices = @transform_10, window_bounds = array<i64: 1, 128>}, {transform_indices = @transform_11, window_bounds = array<i64: 8, 128>}]} {
    %c0 = arith.constant 0 : index
    %c0_0 = arith.constant 0 : index
    %0 = vector.load %arg2[%c0, %c0_0] : memref<8x1xi32, #tpu.memory_space<vmem>>, vector<8x1xi32>
    %c307_i32 = arith.constant 307 : i32
    %1 = vector.broadcast %c307_i32 : i32 to vector<8x1xi32>
    %2 = arith.muli %0, %1 : vector<8x1xi32>
    %c255_i32 = arith.constant 255 : i32
    %3 = vector.broadcast %c255_i32 : i32 to vector<8x1xi32>
    %4 = arith.andi %2, %3 : vector<8x1xi32>
    %5 = tpu.iota {dimensions = array<i32: 1>} : vector<8x8xi32>
    %6 = vector.broadcast %4 : vector<8x1xi32> to vector<8x8xi32>
    %7 = arith.shrsi %6, %5 : vector<8x8xi32>
    %c1_i32 = arith.constant 1 : i32
    %8 = vector.broadcast %c1_i32 : i32 to vector<8x8xi32>
    %9 = arith.andi %7, %8 : vector<8x8xi32>
    %10 = arith.sitofp %9 : vector<8x8xi32> to vector<8x8xf32>
    %c0_1 = arith.constant 0 : index
    %c0_2 = arith.constant 0 : index
    %11 = vector.load %arg3[%c0_1, %c0_2] : memref<8x24xf32, #tpu.memory_space<vmem>>, vector<8x24xf32>
    %cst = arith.constant dense<0.000000e+00> : vector<8x24xf32>
    %12 = tpu.matmul %10, %11, %cst {dimension_numbers = #tpu.dot_dimension_numbers<[1], [0], [0], [1], [0, 0, 1, 1], [], []>} : vector<8x8xf32>, vector<8x24xf32>, vector<8x24xf32> -> vector<8x24xf32>
    %c0_3 = arith.constant 0 : index
    %c0_4 = arith.constant 0 : index
    %13 = vector.load %arg4[%c0_3, %c0_4] : memref<1x24xf32, #tpu.memory_space<vmem>>, vector<1x24xf32>
    %14 = vector.broadcast %13 : vector<1x24xf32> to vector<8x24xf32>
    %15 = arith.addf %12, %14 : vector<8x24xf32>
    %cst_5 = arith.constant 0.000000e+00 : f32
    %16 = vector.broadcast %cst_5 : f32 to vector<8x24xf32>
    %17 = arith.cmpf ogt, %15, %16 : vector<8x24xf32>
    %cst_6 = arith.constant 0.00999999977 : f32
    %18 = vector.broadcast %cst_6 : f32 to vector<8x24xf32>
    %19 = arith.mulf %18, %15 : vector<8x24xf32>
    %20 = arith.select %17, %15, %19 : vector<8x24xi1>, vector<8x24xf32>
    %c0_7 = arith.constant 0 : index
    %c0_8 = arith.constant 0 : index
    %21 = vector.load %arg5[%c0_7, %c0_8] : memref<24x16xf32, #tpu.memory_space<vmem>>, vector<24x16xf32>
    %cst_9 = arith.constant dense<0.000000e+00> : vector<8x16xf32>
    %22 = tpu.matmul %20, %21, %cst_9 {dimension_numbers = #tpu.dot_dimension_numbers<[1], [0], [0], [1], [0, 0, 1, 1], [], []>} : vector<8x24xf32>, vector<24x16xf32>, vector<8x16xf32> -> vector<8x16xf32>
    %c0_10 = arith.constant 0 : index
    %c0_11 = arith.constant 0 : index
    %23 = vector.load %arg6[%c0_10, %c0_11] : memref<1x16xf32, #tpu.memory_space<vmem>>, vector<1x16xf32>
    %24 = vector.broadcast %23 : vector<1x16xf32> to vector<8x16xf32>
    %25 = arith.addf %22, %24 : vector<8x16xf32>
    %cst_12 = arith.constant 0.000000e+00 : f32
    %26 = vector.broadcast %cst_12 : f32 to vector<8x16xf32>
    %27 = arith.cmpf ogt, %25, %26 : vector<8x16xf32>
    %cst_13 = arith.constant 0.00999999977 : f32
    %28 = vector.broadcast %cst_13 : f32 to vector<8x16xf32>
    %29 = arith.mulf %28, %25 : vector<8x16xf32>
    %30 = arith.select %27, %25, %29 : vector<8x16xi1>, vector<8x16xf32>
    %c0_14 = arith.constant 0 : index
    %c0_15 = arith.constant 0 : index
    %31 = vector.load %arg1[%c0_14, %c0_15] : memref<8x16xf32, #tpu.memory_space<vmem>>, vector<8x16xf32>
    %c0_16 = arith.constant 0 : index
    %c0_17 = arith.constant 0 : index
    %32 = vector.load %arg7[%c0_16, %c0_17] : memref<16x32xf32, #tpu.memory_space<vmem>>, vector<16x32xf32>
    %cst_18 = arith.constant dense<0.000000e+00> : vector<8x32xf32>
    %33 = tpu.matmul %31, %32, %cst_18 {dimension_numbers = #tpu.dot_dimension_numbers<[1], [0], [0], [1], [0, 0, 1, 1], [], []>} : vector<8x16xf32>, vector<16x32xf32>, vector<8x32xf32> -> vector<8x32xf32>
    %c0_19 = arith.constant 0 : index
    %c0_20 = arith.constant 0 : index
    %34 = vector.load %arg8[%c0_19, %c0_20] : memref<16x32xf32, #tpu.memory_space<vmem>>, vector<16x32xf32>
    %cst_21 = arith.constant dense<0.000000e+00> : vector<8x32xf32>
    %35 = tpu.matmul %30, %34, %cst_21 {dimension_numbers = #tpu.dot_dimension_numbers<[1], [0], [0], [1], [0, 0, 1, 1], [], []>} : vector<8x16xf32>, vector<16x32xf32>, vector<8x32xf32> -> vector<8x32xf32>
    %36 = arith.addf %33, %35 : vector<8x32xf32>
    %c0_22 = arith.constant 0 : index
    %c0_23 = arith.constant 0 : index
    %37 = vector.load %arg9[%c0_22, %c0_23] : memref<1x32xf32, #tpu.memory_space<vmem>>, vector<1x32xf32>
    %38 = vector.broadcast %37 : vector<1x32xf32> to vector<8x32xf32>
    %39 = arith.addf %36, %38 : vector<8x32xf32>
    %cst_24 = arith.constant 0.000000e+00 : f32
    %40 = vector.broadcast %cst_24 : f32 to vector<8x32xf32>
    %41 = arith.cmpf ogt, %39, %40 : vector<8x32xf32>
    %cst_25 = arith.constant 0.00999999977 : f32
    %42 = vector.broadcast %cst_25 : f32 to vector<8x32xf32>
    %43 = arith.mulf %42, %39 : vector<8x32xf32>
    %44 = arith.select %41, %39, %43 : vector<8x32xi1>, vector<8x32xf32>
    %c0_26 = arith.constant 0 : index
    %c0_27 = arith.constant 0 : index
    %45 = vector.load %arg10[%c0_26, %c0_27] : memref<32x128xf32, #tpu.memory_space<vmem>>, vector<32x128xf32>
    %cst_28 = arith.constant dense<0.000000e+00> : vector<8x128xf32>
    %46 = tpu.matmul %44, %45, %cst_28 {dimension_numbers = #tpu.dot_dimension_numbers<[1], [0], [0], [1], [0, 0, 1, 1], [], []>} : vector<8x32xf32>, vector<32x128xf32>, vector<8x128xf32> -> vector<8x128xf32>
    %c0_29 = arith.constant 0 : index
    %c0_30 = arith.constant 0 : index
    %47 = vector.load %arg11[%c0_29, %c0_30] : memref<1x128xf32, #tpu.memory_space<vmem>>, vector<1x128xf32>
    %48 = vector.broadcast %47 : vector<1x128xf32> to vector<8x128xf32>
    %49 = arith.addf %46, %48 : vector<8x128xf32>
    %c0_31 = arith.constant 0 : index
    %c0_32 = arith.constant 0 : index
    %50 = vector.load %arg12[%c0_31, %c0_32] : memref<8x128xf32, #tpu.memory_space<vmem>>, vector<8x128xf32>
    tpu.vector_store %arg12[%c0_31, %c0_32], %49 {strides = array<i32>} : memref<8x128xf32, #tpu.memory_space<vmem>>, vector<8x128xf32>,
    return
  }
  func.func @transform_0(%arg0: i32) -> (i32, i32) {
    %c0_i32 = arith.constant 0 : i32
    %c0_i32_0 = arith.constant 0 : i32
    return %arg0, %c0_i32 : i32, i32
  }
  func.func @transform_1(%arg0: i32) -> (i32, i32) {
    %c0_i32 = arith.constant 0 : i32
    %c0_i32_0 = arith.constant 0 : i32
    return %arg0, %c0_i32 : i32, i32
  }
  func.func @transform_2(%arg0: i32) -> (i32, i32) {
    %c0_i32 = arith.constant 0 : i32
    %c0_i32_0 = arith.constant 0 : i32
    %c0_i32_1 = arith.constant 0 : i32
    return %c0_i32, %c0_i32_0 : i32, i32
  }
  func.func @transform_3(%arg0: i32) -> (i32, i32) {
    %c0_i32 = arith.constant 0 : i32
    %c0_i32_0 = arith.constant 0 : i32
    %c0_i32_1 = arith.constant 0 : i32
    return %c0_i32, %c0_i32_0 : i32, i32
  }
  func.func @transform_4(%arg0: i32) -> (i32, i32) {
    %c0_i32 = arith.constant 0 : i32
    %c0_i32_0 = arith.constant 0 : i32
    %c0_i32_1 = arith.constant 0 : i32
    return %c0_i32, %c0_i32_0 : i32, i32
  }
  func.func @transform_5(%arg0: i32) -> (i32, i32) {
    %c0_i32 = arith.constant 0 : i32
    %c0_i32_0 = arith.constant 0 : i32
    %c0_i32_1 = arith.constant 0 : i32
    return %c0_i32, %c0_i32_0 : i32, i32
  }
  func.func @transform_6(%arg0: i32) -> (i32, i32) {
    %c0_i32 = arith.constant 0 : i32
    %c0_i32_0 = arith.constant 0 : i32
    %c0_i32_1 = arith.constant 0 : i32
    return %c0_i32, %c0_i32_0 : i32, i32
  }
  func.func @transform_7(%arg0: i32) -> (i32, i32) {
    %c0_i32 = arith.constant 0 : i32
    %c0_i32_0 = arith.constant 0 : i32
    %c0_i32_1 = arith.constant 0 : i32
    return %c0_i32, %c0_i32_0 : i32, i32
  }
  func.func @transform_8(%arg0: i32) -> (i32, i32) {
    %c0_i32 = arith.constant 0 : i32
    %c0_i32_0 = arith.constant 0 : i32
    %c0_i32_1 = arith.constant 0 : i32
    return %c0_i32, %c0_i32_0 : i32, i32
  }
  func.func @transform_9(%arg0: i32) -> (i32, i32) {
    %c0_i32 = arith.constant 0 : i32
    %c0_i32_0 = arith.constant 0 : i32
    %c0_i32_1 = arith.constant 0 : i32
    return %c0_i32, %c0_i32_0 : i32, i32
  }
  func.func @transform_10(%arg0: i32) -> (i32, i32) {
    %c0_i32 = arith.constant 0 : i32
    %c0_i32_0 = arith.constant 0 : i32
    %c0_i32_1 = arith.constant 0 : i32
    return %c0_i32, %c0_i32_0 : i32, i32
  }
  func.func @transform_11(%arg0: i32) -> (i32, i32) {
    %c0_i32 = arith.constant 0 : i32
    %c0_i32_0 = arith.constant 0 : i32
    return %arg0, %c0_i32 : i32, i32
  }
}

</mosaic_0001>

<bundles_post_ra>
// kernel: tpu_custom_call.1
= control target key start
LH: loop header
LB: loop body
LE: loop exit
PB: predicated region body
PF: predicated region fallthrough
CT: control target
= control target key end

     0   :  { %16 = vsyncpa [#allocation3], 0  ;;  %s871_s0 = inlined_call_operand.hbm [shape: f32[8,16], index: 0, kind: input, shape index: {}]   ;;  %s872_s1 = inlined_call_operand.vmem [shape: s32[8,1], index: 1, kind: input, shape index: {}]   ;;  %s873_s2 = inlined_call_operand.hbm [shape: f32[8,24], index: 2, kind: input, shape index: {}]   ;;  %s874_s3 = inlined_call_operand.hbm [shape: f32[1,24], index: 3, kind: input, shape index: {}]   ;;  %s875_s4 = inlined_call_operand.vmem [shape: f32[24,16], index: 4, kind: input, shape index: {}]   ;;  %s876_s5 = inlined_call_operand.vmem [shape: f32[1,16], index: 5, kind: input, shape index: {}]   ;;  %s877_s6 = inlined_call_operand.vmem [shape: f32[16,32], index: 6, kind: input, shape index: {}]   ;;  %s878_s7 = inlined_call_operand.vmem [shape: f32[16,32], index: 7, kind: input, shape index: {}]   ;;  %s879_s8 = inlined_call_operand.vmem [shape: f32[1,32], index: 8, kind: input, shape index: {}]   ;;  %s880_s9 = inlined_call_operand.vmem [shape: f32[32,128], index: 9, kind: input, shape index: {}]   ;;  %s881_s10 = inlined_call_operand.vmem [shape: f32[1,128], index: 10, kind: input, shape index: {}]   ;;  %s882_s11 = inlined_call_operand.hbm [shape: f32[8,128], index: 11, kind: output, shape index: {}]  }
   0x1   :  { %17 = vsyncpa [#allocation6], 0 }
   0x2   :  { %18 = vsyncpa [#allocation4], 0  ;;  %s705_s17 = smov [#allocation5]   ;;  %s706_s19 = smov [#allocation2]  }
   0x3   :  { %s37_s18 = sshll.u32 %s705_s17, 4  ;;  %s25_s20 = sshll.u32 %s706_s19, 4  ;;  %s38_s18 = int_to_ptr.vmem [resolvable:$true] %s37_s18  ;;  %s26_s20 = int_to_ptr.vmem [resolvable:$true] %s25_s20 }
   0x4   :  { %s611_s23 = scalar_lea.hbm %s873_s2, 128 }
   0x5   :  { %p612_p0 = scmp.ne.s32.totalorder %s873_s2, %s611_s23  ;;  %p615_p1 = scmp.lt.u32.totalorder %s611_s23, %s873_s2 }
   0x7   :  { %p617_p2 = pnand %p615_p1, %p612_p0 }
   0x9   :  { %620 = shalt.err (!%p617_p2)
}
   0xa   :  { %s621_s28 = scalar_lea.vmem %s38_s18, 128  ;;  %p626_p4 = scmp.lt.s32.totalorder %s38_s18, %s38_s18 }
   0xb   :  { %p622_p3 = scmp.ne.s32.totalorder %s38_s18, %s621_s28  ;;  %p627_p5 = scmp.lt.s32.totalorder %s621_s28, %s621_s28 }
   0xd   :  { %p628_p6 = por %p627_p5, %p626_p4 }
   0xf   :  { %p629_p7 = pnand %p628_p6, %p622_p3 }
  0x11   :  { %632 = shalt.err (!%p629_p7)
}
  0x12   :  { %40 = dma.hbm_to_vmem [thread:$0]  %s873_s2, 128, %s38_s18, [#allocation6]  }
  0x13   :  { %s633_s14 = scalar_lea.hbm %s871_s0, 128 }
  0x14   :  { %p634_p8 = scmp.ne.s32.totalorder %s871_s0, %s633_s14  ;;  %p637_p9 = scmp.lt.u32.totalorder %s633_s14, %s871_s0 }
  0x16   :  { %p639_p10 = pnand %p637_p9, %p634_p8 }
  0x18   :  { %642 = shalt.err (!%p639_p10)
}
  0x19   :  { %s643_s21 = scalar_lea.vmem %s26_s20, 128  ;;  %p648_p12 = scmp.lt.s32.totalorder %s26_s20, %s26_s20 }
  0x1a   :  { %p644_p11 = scmp.ne.s32.totalorder %s26_s20, %s643_s21  ;;  %p649_p13 = scmp.lt.s32.totalorder %s643_s21, %s643_s21 }
  0x1c   :  { %p650_p0 = por %p649_p13, %p648_p12 }
  0x1e   :  { %p651_p1 = pnand %p650_p0, %p644_p11 }
  0x20   :  { %654 = shalt.err (!%p651_p1)
}
  0x21   :  { %28 = dma.hbm_to_vmem [thread:$0]  %s871_s0, 128, %s26_s20, [#allocation3]  }
  0x22   :  { %s707_s22 = smov [#allocation7]   ;;  %s655_s26 = scalar_lea.hbm %s874_s3, 16 }
  0x23   :  { %s47_s23 = sshll.u32 %s707_s22, 4  ;;  %p656_p2 = scmp.ne.s32.totalorder %s874_s3, %s655_s26  ;;  %s48_s23 = int_to_ptr.vmem [resolvable:$true] %s47_s23 }
  0x24   :  { %p659_p3 = scmp.lt.u32.totalorder %s655_s26, %s874_s3 }
  0x26   :  { %p661_p4 = pnand %p659_p3, %p656_p2 }
  0x28   :  { %664 = shalt.err (!%p661_p4)
}
  0x29   :  { %s665_s12 = scalar_lea.vmem %s48_s23, 16  ;;  %s669_s0 = scalar_lea.vmem %s48_s23, 32 }
  0x2a   :  { %p666_p5 = scmp.ne.s32.totalorder %s48_s23, %s665_s12  ;;  %p670_p6 = scmp.lt.s32.totalorder %s48_s23, %s48_s23 }
  0x2b   :  { %p671_p7 = scmp.lt.s32.totalorder %s669_s0, %s665_s12 }
  0x2d   :  { %p672_p8 = por %p671_p7, %p670_p6 }
  0x2f   :  { %p673_p9 = pnand %p672_p8, %p666_p5 }
  0x31   :  { %676 = shalt.err (!%p673_p9)
}
  0x32   :  { %50 = dma.hbm_to_vmem [thread:$0]  %s874_s3, 16, %s48_s23, [#allocation6]  }
  0x33   :  { %699 = dma.done.wait [#allocation3], 128  }
  0x34   :  { %700 = vsyncadd [#allocation3], 4294967168 }
  0x35   :  { %701 = dma.done.wait [#allocation6], 144  }
  0x36   :  { %702 = vsyncadd [#allocation6], 4294967152  ;;  %v708_v0 = vmov 0   ;;  %v74_v1 = vld [vmem:[%s872_s1] sm:$0xff]  ;;  %v709_v4 = vmov 0.0   ;;  %v85_v5 = vld [vmem:[#allocation5] sm:$0xff]  ;;  %v77_v6 = vlaneseq }
  0x37   :  { %610 = vset.pattern.permute.xlu0 %v708_v0  ;;  %v75_v2 = vmul.u32 307, %v74_v1  ;;  %548 = vmatprep.subr.mxu0 %v709_v4  ;;  %vm710_vm0 = vmmov 0   ;;  %vm93_vm1 = vcmask 64512   ;;  %v170_v12 = vld [vmem:[%s875_s4] sm:$0xff]  ;;  %v171_v13 = vld [vmem:[%s875_s4 + $0x8] sm:$0xff]  ;;  %v711_v15 = vmov 0.0|0.0  }
  0x38   :  { %549 = vmatpush3.msra.mxu0 %v85_v5  ;;  %550 = vmatprep.mubr.msk.f32.mxu0 %vm710_vm0, %v709_v4  ;;  %v78_v7 = vand.u32 127, %v77_v6  ;;  %v588_v14 = vpack.c.bf16 %v171_v13, %v170_v12  ;;  %v172_v16 = vld [vmem:[%s875_s4 + $0x10] sm:$0xff]  ;;  %vm180_vm3 = vcmask 195584   ;;  %v260_v23 = vld [vmem:[%s878_s7] sm:$0xff]  ;;  %v261_v24 = vld [vmem:[%s878_s7 + $0x8] sm:$0xff]  ;;  %vm262_vm5 = vcmask 130048  }
  0x39   :  { %v76_v3 = vand.u32 255, %v75_v2  ;;  %559 = vmatprep.mubr.msk.f32.mxu1 %vm710_vm0, %v709_v4  ;;  %587 = vmatprep.subr.bf16.mxu1 %v711_v15  ;;  %v522_v17 = vld [vmem:[#allocation7] ss:$0 sm:$0xff]  ;;  %v591_v25 = vpack.c.bf16 %v261_v24, %v260_v23  ;;  %v524_v26 = vld [vmem:[%s876_s5] ss:$0 sm:$0xff]  ;;  %v259_v29 = vld [vmem:[%s877_s6 + $0x8] sm:$0xff] }
  0x3a   :  { %590 = vmatprep.subr.bf16.mxu0 %v711_v15  ;;  %589 = vmatpush3.bf16.msra.mxu1 %v588_v14  ;;  %v258_v28 = vld [vmem:[%s877_s6] sm:$0xff]  ;;  %v421_v37 = vld [vmem:[%s880_s9 + $0x8] sm:$0xff]  ;;  %v422_v39 = vld [vmem:[%s880_s9 + $0x10] sm:$0xff]  ;;  %vm431_vm7 = vcmask 261120  }
  0x3b   :  { %80 = vperm.xlu0 %610, %v76_v3   ;;  %557 = vmatprep.subr.mxu1 %v709_v4  ;;  %v594_v33 = vpack.c.bf16 %v259_v29, %v258_v28  ;;  %v257_v35 = vld [vmem:[#allocation2] sm:$0xff]  ;;  %v423_v40 = vld [vmem:[%s880_s9 + $0x18] sm:$0xff] }
  0x3c   :  { %v420_v36 = vld [vmem:[%s880_s9] sm:$0xff]  ;;  %v600_v41 = vpack.c.bf16 %v423_v40, %v422_v39  ;;  %s712_s9 = smov [#allocation8]  }
  0x3d   :  { %v597_v38 = vpack.c.bf16 %v421_v37, %v420_v36  ;;  %v528_v45 = vld [vmem:[%s879_s8] ss:$0 sm:$0xff]  ;;  %s512_s3 = sshll.u32 %s712_s9, 4  ;;  %s513_s3 = int_to_ptr.vmem [resolvable:$true] %s512_s3 }
  0x3e   :  { %558 = vmatpush3.msra.mxu1 %v172_v16  ;;  %v529_v51 = vld [vmem:[%s881_s10] ss:$0 sm:$0xff]  ;;  %s677_s8 = scalar_lea.vmem %s513_s3, 128  ;;  %p682_p11 = scmp.lt.s32.totalorder %s513_s3, %s513_s3 }
  0x3f   :  { %596 = vmatprep.subr.bf16.mxu1 %v711_v15  ;;  %p678_p10 = scmp.ne.s32.totalorder %s513_s3, %s677_s8  ;;  %p683_p12 = scmp.lt.s32.totalorder %s677_s8, %s677_s8 }
  0x41   :  { %p684_p13 = por %p683_p12, %p682_p11 }
  0x43   :  { %p685_p0 = pnand %p684_p13, %p678_p10 }
  0xba   :  { %v81_v8 = vpop.permute.xlu0 %80 }
  0xbb   :  { %v82_v9 = vshra.s32 %v81_v8, %v78_v7 }
  0xbd   :  { %v83_v10 = vand.u32 1, %v82_v9 }
  0xbf   :  { %v84_v11 = vcvt.s32.f32 %v83_v10 }
  0xc1   :  { %551 = vmatmul.mubr.msk.f32.vlgmr.msra.gmra.mrb[0].mxu0 %vm93_vm1, %v84_v11 }
  0xc2   :  { %566 = vmatprep.mubr.msk.f32.mxu0 %vm710_vm0, %v709_v4  ;;  %592 = vmatpush3.bf16.msra.mxu0 %v591_v25 }
  0xc3   :  { %593 = vmatprep.subr.bf16.mxu0 %v711_v15 }
 0x194   :  { %v163_v18 = vpop.f32.mrb[0].mxu0 }
 0x195   :  { %v164_v19 = vadd.f32 %v522_v17, %v163_v18  ;;  %v552_v20 = vpop.f32.mrb[1].mxu0 }
 0x197   :  { %vm167_vm2 = vcmp.gt.f32.partialorder %v164_v19, 0.0  ;;  %v168_v21 = vmul.f32 0.01, %v164_v19 }
 0x199   :  { %v169_v22 = vsel %vm167_vm2, %v164_v19, %v168_v21 }
 0x19a   :  { %560 = vmatmul.mubr.msk.f32.vlgmr.msra.gmra.mrb[0].mxu1 %vm180_vm3, %v169_v22 }
 0x19b   :  { %584 = vmatprep.mubr.msk.f32.mxu1 %vm710_vm0, %v709_v4  ;;  %598 = vmatpush3.bf16.msra.mxu1 %v597_v38 }
 0x19c   :  { %599 = vmatprep.subr.bf16.mxu1 %v711_v15 }
 0x19f   :  { %601 = vmatpush3.bf16.msra.mxu1 %v600_v41 }
 0x26d   :  { %v250_v27 = vpop.f32.mrb[0].mxu1 }
 0x26e   :  { %v251_v30 = vadd.f32 %v524_v26, %v250_v27  ;;  %v561_v31 = vpop.f32.mrb[1].mxu1 }
 0x270   :  { %vm254_vm4 = vcmp.gt.f32.partialorder %v251_v30, 0.0  ;;  %v255_v32 = vmul.f32 0.01, %v251_v30 }
 0x272   :  { %v256_v34 = vsel %vm254_vm4, %v251_v30, %v255_v32 }
 0x273   :  { %567 = vmatmul.mubr.msk.f32.vlgmr.msra.gmra.mrb[2].mxu0 %vm262_vm5, %v256_v34 }
 0x274   :  { %595 = vmatpush3.bf16.msra.mxu0 %v594_v33  ;;  %573 = vmatprep.mubr.msk.f32.mxu0 %vm710_vm0, %v709_v4 }
 0x277   :  { %574 = vmatmul.mubr.msk.f32.vlgmr.msra.gmra.mrb[4].mxu0 %vm262_vm5, %v257_v35 }
 0x346   :  { %v332_v42 = vpop.f32.mrb[2].mxu0 }
 0x347   :  { %v568_v43 = vpop.f32.mrb[3].mxu0 }
 0x34a   :  { %v405_v44 = vpop.f32.mrb[4].mxu0 }
 0x34b   :  { %v406_v46 = vadd.f32 %v405_v44, %v332_v42  ;;  %v575_v47 = vpop.f32.mrb[5].mxu0 }
 0x34d   :  { %v416_v48 = vadd.f32 %v528_v45, %v406_v46 }
 0x34f   :  { %vm417_vm6 = vcmp.gt.f32.partialorder %v416_v48, 0.0  ;;  %v418_v49 = vmul.f32 0.01, %v416_v48 }
 0x351   :  { %v419_v50 = vsel %vm417_vm6, %v416_v48, %v418_v49 }
 0x352   :  { %585 = vmatmul.mubr.msk.f32.vlgmr.msra.gmra.mrb[2].mxu1 %vm431_vm7, %v419_v50 }
 0x425   :  { %v501_v52 = vpop.f32.mrb[2].mxu1 }
 0x426   :  { %v502_v53 = vadd.f32 %v529_v51, %v501_v52  ;;  %v586_v54 = vpop.f32.mrb[3].mxu1 }
 0x428   :  { %505 = vst [vmem:[#allocation8] sm:$0xff] %v502_v53 }
 0x429   :  { %688 = shalt.err (!%p685_p0)
}
 0x42a   :  { %s689_s19 = scalar_lea.hbm %s882_s11, 128 }
 0x42b   :  { %p690_p1 = scmp.ne.s32.totalorder %s882_s11, %s689_s19  ;;  %p693_p2 = scmp.lt.u32.totalorder %s689_s19, %s882_s11 }
 0x42d   :  { %p695_p3 = pnand %p693_p2, %p690_p1 }
 0x42f   :  { %698 = shalt.err (!%p695_p3)
}
 0x430   :  { %515 = dma.vmem_to_hbm [thread:$0]  %s513_s3, 128, %s882_s11, [#allocation4]  }
 0x431   :  { %703 = dma.done.wait [#allocation4], 128  }
 0x432   :  { %704 = vsyncadd [#allocation4], 4294967168 }
 0x433   :  { %519 = vsyncpa [#allocation3], 1 }
 0x434   :  { %520 = vsyncpa [#allocation6], 1 }
 0x435   :  { %521 = vsyncpa [#allocation4], 1 }

</bundles_post_ra>
